<compile_context>
chip_gen: v6e
topology: v6e:2x2x1
jax: 0.10.0
libtpu: 0.0.40
codegen_flags: <defaults>
</compile_context>

<pallas_src>
import functools

import jax
import jax.numpy as jnp
from jax.experimental import pallas as pl
from jax.experimental.pallas import tpu as pltpu


def _round_up(v, m):
    return ((v + m - 1) // m) * m


def _pick_block(target, padded, base):
    """Largest multiple of `base` that is <= min(target, padded) and divides `padded`."""
    hi = max(base, (min(target, padded) // base) * base)
    for cand in range(hi, base - 1, -base):
        if padded % cand == 0:
            return cand
    return base


def _sublane_multiple(dtype):
    return {4: 8, 2: 16, 1: 32}.get(jnp.dtype(dtype).itemsize, 8)


# --------------------------------------------------------------------------
# Kernels
# --------------------------------------------------------------------------
def _linear_kernel_acc(x_ref, w_ref, b_ref, o_ref, acc_ref):
    """One (bm, bn) output tile accumulated over the K grid axis (last)."""
    k = pl.program_id(2)

    @pl.when(k == 0)
    def _():
        acc_ref[...] = jnp.zeros_like(acc_ref)

    acc_ref[...] += jnp.dot(
        x_ref[...], w_ref[...], preferred_element_type=jnp.float32
    )

    @pl.when(k == pl.num_programs(2) - 1)
    def _():
        o_ref[...] = (acc_ref[...] + b_ref[...]).astype(o_ref.dtype)


def _linear_kernel_single_k(x_ref, w_ref, b_ref, o_ref):
    """Whole reduction fits one tile: no accumulator, no init/finalize."""
    o_ref[...] = (
        jnp.dot(x_ref[...], w_ref[...], preferred_element_type=jnp.float32)
        + b_ref[...]
    ).astype(o_ref.dtype)


# --------------------------------------------------------------------------
# Parameter preparation (done ONCE, outside the forward path)
# --------------------------------------------------------------------------
def prepare_linear_probe_params(w_t, b, *, weight_dtype=jnp.bfloat16):
    """Pad + cast the probe parameters once (hoisted out of the forward path).

    w_t: (input_dim, output_dim) == PyTorch `linear.weight.T`; b: (output_dim,)
    Returns (w_p, b_p): weight padded to (Kp, Np) multiples of 128 and cast to
    `weight_dtype` (bf16 by default — halves the HBM weight stream), bias as an
    f32 (1, Np) slab for in-kernel broadcast. Note the bf16 default rounds the
    stored weight; pass weight_dtype=jnp.float32 for a bit-exact f32 path.
    """
    K, N = w_t.shape
    Kp, Np = _round_up(K, 128), _round_up(N, 128)
    w_p = w_t
    if Kp != K or Np != N:
        w_p = jnp.pad(w_p, ((0, Kp - K), (0, Np - N)))
    w_p = w_p.astype(weight_dtype)
    b_p = b if Np == N else jnp.pad(b, (0, Np - N))
    b_p = b_p.astype(jnp.float32).reshape(1, Np)
    return w_p, b_p


# --------------------------------------------------------------------------
# Forward
# --------------------------------------------------------------------------
@functools.partial(
    jax.jit, static_argnames=("out_dim", "block_m", "block_n", "block_k")
)
def linear_probe_forward(
    x, w_p, b_p, *, out_dim, block_m=512, block_n=512, block_k=2048
):
    """y = x @ w_t + b, with (w_p, b_p) from prepare_linear_probe_params().

    x: (M, K); w_p: (Kp, Np) pre-padded / pre-cast; b_p: (1, Np) f32.
    Returns (M, out_dim) in x.dtype. Activations are cast to w_p.dtype for the
    MXU matmul; accumulation and the bias add stay in f32 inside the kernel.
    """
    M, K = x.shape
    Kp, Np = w_p.shape
    assert K <= Kp, "x input_dim exceeds prepared weight"
    assert b_p.shape == (1, Np), "bias must be prepared alongside the weight"
    assert out_dim <= Np, "out_dim exceeds prepared weight width"

    out_dtype = x.dtype
    compute_dtype = w_p.dtype
    in_bytes = jnp.dtype(compute_dtype).itemsize
    out_bytes = jnp.dtype(out_dtype).itemsize

    # Padded extents: only up to the sublane/lane base (never over-pads by a
    # whole tile); tile sizes are then chosen to divide the padded extents.
    sub = _sublane_multiple(compute_dtype)
    Mp = _round_up(M, sub)

    bm = _pick_block(block_m, Mp, sub)
    bn = _pick_block(block_n, Np, 128)
    bk = _pick_block(block_k, Kp, 128)

    # v7x megacore: make sure the parallel grid axes expose >= 2 tiles when the
    # problem allows it, so both TensorCores get work.
    if (Mp // bm) * (Np // bn) == 1:
        if bn % 256 == 0:
            bn //= 2
        elif bm % (2 * sub) == 0:
            bm //= 2

    # Per-call activation pad + cast (weights/bias were prepared once).
    x_p = x
    if Mp != M or Kp != K:
        x_p = jnp.pad(x_p, ((0, Mp - M), (0, Kp - K)))
    x_p = x_p.astype(compute_dtype)

    n_m, n_n, n_k = Mp // bm, Np // bn, Kp // bk

    # Honest HBM traffic: x is re-streamed per N tile, W per M tile (advisory).
    cost = pl.CostEstimate(
        flops=2 * Mp * Kp * Np,
        transcendentals=0,
        bytes_accessed=(
            Mp * Kp * in_bytes * n_n
            + Kp * Np * in_bytes * n_m
            + Np * 4
            + Mp * Np * out_bytes
        ),
    )

    # VMEM budget from the actual tiles (double-buffered x/w/bias/out, plus the
    # f32 accumulator when K is tiled), capped well under v7x's 64 MiB.
    vmem_bytes = (
        2 * (bm * bk * in_bytes + bk * bn * in_bytes + bn * 4 + bm * bn * out_bytes)
        + (bm * bn * 4 if n_k > 1 else 0)
        + (2 << 20)
    )
    vmem_bytes = int(min(max(vmem_bytes, 16 << 20), 48 << 20))

    if n_k == 1:
        out_p = pl.pallas_call(
            _linear_kernel_single_k,
            out_shape=jax.ShapeDtypeStruct((Mp, Np), out_dtype),
            grid_spec=pltpu.PrefetchScalarGridSpec(
                num_scalar_prefetch=0,
                grid=(n_m, n_n),
                in_specs=[
                    pl.BlockSpec((bm, bk), lambda i, j: (i, 0)),   # x tile
                    pl.BlockSpec((bk, bn), lambda i, j: (0, j)),   # weight tile
                    pl.BlockSpec((1, bn), lambda i, j: (0, j)),    # bias slab
                ],
                out_specs=pl.BlockSpec((bm, bn), lambda i, j: (i, j)),
            ),
            compiler_params=pltpu.CompilerParams(
                dimension_semantics=("parallel", "parallel"),
                vmem_limit_bytes=vmem_bytes,
            ),
            cost_estimate=cost,
        )(x_p, w_p, b_p)
    else:
        out_p = pl.pallas_call(
            _linear_kernel_acc,
            out_shape=jax.ShapeDtypeStruct((Mp, Np), out_dtype),
            grid_spec=pltpu.PrefetchScalarGridSpec(
                num_scalar_prefetch=0,
                grid=(n_m, n_n, n_k),
                in_specs=[
                    pl.BlockSpec((bm, bk), lambda i, j, k: (i, k)),  # x tile
                    pl.BlockSpec((bk, bn), lambda i, j, k: (k, j)),  # weight tile
                    pl.BlockSpec((1, bn), lambda i, j, k: (0, j)),   # bias slab
                ],
                out_specs=pl.BlockSpec((bm, bn), lambda i, j, k: (i, j)),
                scratch_shapes=[pltpu.VMEM((bm, bn), jnp.float32)],
            ),
            compiler_params=pltpu.CompilerParams(
                dimension_semantics=("parallel", "parallel", "arbitrary"),
                vmem_limit_bytes=vmem_bytes,
            ),
            cost_estimate=cost,
        )(x_p, w_p, b_p)

    return out_p[:M, :out_dim]


def init_linear_params(key, input_dim, output_dim, dtype=jnp.float32):
    """Deterministic init matching nn.Linear's U(-1/sqrt(in), 1/sqrt(in))."""
    kw, kb = jax.random.split(key)
    bound = 1.0 / jnp.sqrt(jnp.array(input_dim, dtype=jnp.float32))
    # PyTorch weight shape is (output_dim, input_dim); we store its transpose.
    weight_t = jax.random.uniform(
        kw, (input_dim, output_dim), dtype=dtype, minval=-bound, maxval=bound
    )
    bias = jax.random.uniform(
        kb, (output_dim,), dtype=dtype, minval=-bound, maxval=bound
    )
    return weight_t, bias


if __name__ == "__main__":
    key = jax.random.PRNGKey(0)
    k_x, k_p, k_x2, k_p2 = jax.random.split(key, 4)

    # Small probe shapes consistent with the module.
    batch, input_dim, output_dim = 8, 32, 16
    x = jax.random.normal(k_x, (batch, input_dim), dtype=jnp.float32)
    w_t, b = init_linear_params(k_p, input_dim, output_dim)

    # Default path: bf16 operands (prepared once), f32 accumulation in-kernel.
    w_bf16, b_pad = prepare_linear_probe_params(w_t, b)
    out = jax.block_until_ready(
        linear_probe_forward(x, w_bf16, b_pad, out_dim=output_dim)
    )
    ref_bf16 = (
        x.astype(jnp.bfloat16).astype(jnp.float32)
        @ w_t.astype(jnp.bfloat16).astype(jnp.float32)
        + b
    )
    assert out.shape == (batch, output_dim)
    assert out.dtype == x.dtype
    assert jnp.allclose(out, ref_bf16, atol=1e-2, rtol=1e-2)

    # f32 weight path (single-K fast path, no accumulator scratch).
    # Tolerance allows for MXU matmul precision on f32 operands.
    w_f32, b_pad32 = prepare_linear_probe_params(w_t, b, weight_dtype=jnp.float32)
    out_f32 = jax.block_until_ready(
        linear_probe_forward(x, w_f32, b_pad32, out_dim=output_dim)
    )
    assert jnp.allclose(out_f32, x @ w_t + b, atol=1e-2, rtol=1e-2)

    # Multi-tile / multi-K-step path (exercises the accumulator kernel) with
    # deliberately small blocks to force a (2, 2, 3) grid.
    M2, K2, N2 = 64, 384, 256
    x2 = jax.random.normal(k_x2, (M2, K2), dtype=jnp.float32)
    w_t2, b2 = init_linear_params(k_p2, K2, N2)
    w2_p, b2_p = prepare_linear_probe_params(w_t2, b2, weight_dtype=jnp.float32)
    out2 = jax.block_until_ready(
        linear_probe_forward(
            x2, w2_p, b2_p, out_dim=N2, block_m=32, block_n=128, block_k=128
        )
    )
    assert out2.shape == (M2, N2)
    assert jnp.allclose(out2, x2 @ w_t2 + b2, atol=2e-2, rtol=2e-2)

    print("KERNEL_OK")
</pallas_src>

<mosaic_0001>
module attributes {stable_mosaic.version = 11 : i64} {
  func.func @_linear_kernel_single_k(%arg0: i32, %arg1: i32, %arg2: memref<16x128xbf16, #tpu.memory_space<vmem>>, %arg3: memref<128x128xbf16, #tpu.memory_space<vmem>>, %arg4: memref<1x128xf32, #tpu.memory_space<vmem>>, %arg5: memref<16x128xf32, #tpu.memory_space<vmem>>) attributes {dimension_semantics = [#tpu.dimension_semantics<parallel>, #tpu.dimension_semantics<parallel>], iteration_bounds = array<i64: 1, 1>, scalar_prefetch = 0 : i64, scratch_operands = 0 : i64, tpu.core_type = #tpu.core_type<tc>, window_params = [{transform_indices = @transform_0, window_bounds = array<i64: 16, 128>}, {transform_indices = @transform_1, window_bounds = array<i64: 128, 128>}, {transform_indices = @transform_2, window_bounds = array<i64: 1, 128>}, {transform_indices = @transform_3, window_bounds = array<i64: 16, 128>}]} {
    %c0 = arith.constant 0 : index
    %c0_0 = arith.constant 0 : index
    %0 = vector.load %arg2[%c0, %c0_0] : memref<16x128xbf16, #tpu.memory_space<vmem>>, vector<16x128xbf16>
    %c0_1 = arith.constant 0 : index
    %c0_2 = arith.constant 0 : index
    %1 = vector.load %arg3[%c0_1, %c0_2] : memref<128x128xbf16, #tpu.memory_space<vmem>>, vector<128x128xbf16>
    %cst = arith.constant dense<0.000000e+00> : vector<16x128xf32>
    %2 = tpu.matmul %0, %1, %cst {dimension_numbers = #tpu.dot_dimension_numbers<[1], [0], [0], [1], [0, 0, 1, 1], [], []>} : vector<16x128xbf16>, vector<128x128xbf16>, vector<16x128xf32> -> vector<16x128xf32>
    %c0_3 = arith.constant 0 : index
    %c0_4 = arith.constant 0 : index
    %3 = vector.load %arg4[%c0_3, %c0_4] : memref<1x128xf32, #tpu.memory_space<vmem>>, vector<1x128xf32>
    %4 = vector.broadcast %3 : vector<1x128xf32> to vector<16x128xf32>
    %5 = arith.addf %2, %4 : vector<16x128xf32>
    %c0_5 = arith.constant 0 : index
    %c0_6 = arith.constant 0 : index
    %6 = vector.load %arg5[%c0_5, %c0_6] : memref<16x128xf32, #tpu.memory_space<vmem>>, vector<16x128xf32>
    tpu.vector_store %arg5[%c0_5, %c0_6], %5 {strides = array<i32>} : memref<16x128xf32, #tpu.memory_space<vmem>>, vector<16x128xf32>,
    return
  }
  func.func @transform_0(%arg0: i32, %arg1: i32) -> (i32, i32) {
    %c0_i32 = arith.constant 0 : i32
    %c0_i32_0 = arith.constant 0 : i32
    return %arg0, %c0_i32 : i32, i32
  }
  func.func @transform_1(%arg0: i32, %arg1: i32) -> (i32, i32) {
    %c0_i32 = arith.constant 0 : i32
    %c0_i32_0 = arith.constant 0 : i32
    return %c0_i32, %arg1 : i32, i32
  }
  func.func @transform_2(%arg0: i32, %arg1: i32) -> (i32, i32) {
    %c0_i32 = arith.constant 0 : i32
    %c0_i32_0 = arith.constant 0 : i32
    return %c0_i32, %arg1 : i32, i32
  }
  func.func @transform_3(%arg0: i32, %arg1: i32) -> (i32, i32) {
    %c0_i32 = arith.constant 0 : i32
    return %arg0, %arg1 : i32, i32
  }
}

</mosaic_0001>

<bundles_post_ra>
// kernel: linear_probe_forward.1
= control target key start
LH: loop header
LB: loop body
LE: loop exit
PB: predicated region body
PF: predicated region fallthrough
CT: control target
= control target key end

     0   :  { %8 = vsyncpa [#allocation3], 0  ;;  %s231_s12 = smov [#allocation2]   ;;  %s271_s0 = inlined_call_operand.vmem [shape: bf16[16,128], index: 0, kind: input, shape index: {}]   ;;  %s272_s1 = inlined_call_operand.hbm [shape: bf16[128,128], index: 1, kind: input, shape index: {}]   ;;  %s273_s2 = inlined_call_operand.vmem [shape: f32[1,128], index: 2, kind: input, shape index: {}]   ;;  %s274_s3 = inlined_call_operand.vmem [shape: f32[16,128], index: 3, kind: output, shape index: {}]  }
   0x1   :  { %s16_s13 = sshll.u32 %s231_s12, 4  ;;  %s17_s13 = int_to_ptr.vmem [resolvable:$true] %s16_s13 }
   0x2   :  { %s217_s14 = scalar_lea.vmem %s17_s13, 1024  ;;  %p222_p1 = scmp.lt.s32.totalorder %s17_s13, %s17_s13 }
   0x3   :  { %p218_p0 = scmp.ne.s32.totalorder %s17_s13, %s217_s14  ;;  %p223_p2 = scmp.lt.s32.totalorder %s217_s14, %s217_s14 }
   0x5   :  { %p224_p3 = por %p223_p2, %p222_p1 }
   0x7   :  { %p225_p4 = pnand %p224_p3, %p218_p0 }
   0x9   :  { %228 = shalt.err (!%p225_p4)
}
   0xa   :  { %s232_s15 = smov 64   ;;  %s233_s16 = smov 4  }
   0xb   :  { %22 = dma.hbm_to_vmem [thread:$0]  %s272_s1, 1024, %s17_s13, [#allocation3], %s232_s15, %s232_s15, %s233_s16  }
   0xc   :  { %229 = dma.done.wait [#allocation3], 1024  }
   0xd   :  { %230 = vsyncadd [#allocation3], 4294966272  ;;  %v234_v0 = vmov 0.0   ;;  %vm235_vm0 = vmmov 0   ;;  %v200_v1 = vld [vmem:[#allocation2 + $0x38] sm:$0xff]   ;;  %v201_v2 = vld [vmem:[#allocation2 + $0x30] sm:$0xff]  }
   0xe   :  { %175 = vmatprep.subr.bf16.mxu0 %v234_v0  ;;  %191 = vmatprep.mubr.msk.bf16.mxu0 %vm235_vm0, %v234_v0  ;;  %v202_v3 = vld [vmem:[#allocation2 + $0x28] sm:$0xff]   ;;  %v203_v4 = vld [vmem:[#allocation2 + $0x20] sm:$0xff]   ;;  %v204_v5 = vld [vmem:[#allocation2 + $0x18] sm:$0xff]  }
   0xf   :  { %176 = vmatpush3.bf16.msra.mxu0 %v200_v1  ;;  %v205_v6 = vld [vmem:[#allocation2 + $0x10] sm:$0xff]   ;;  %v206_v7 = vld [vmem:[#allocation2 + $0x8] sm:$0xff]   ;;  %v207_v8 = vld [vmem:[#allocation2] sm:$0xff]  }
  0x10   :  { %177 = vmatprep.subr.bf16.mxu0 %v234_v0  ;;  %v208_v9 = vld [vmem:[%s271_s0] sm:$0xff]  }
  0x11   :  { %v156_v10 = vld [vmem:[%s273_s2] ss:$0 sm:$0xff] }
  0x13   :  { %178 = vmatpush3.bf16.msra.mxu0 %v201_v2 }
  0x14   :  { %179 = vmatprep.subr.bf16.mxu0 %v234_v0 }
  0x17   :  { %180 = vmatpush3.bf16.msra.mxu0 %v202_v3 }
  0x18   :  { %181 = vmatprep.subr.bf16.mxu0 %v234_v0 }
  0x1b   :  { %182 = vmatpush3.bf16.msra.mxu0 %v203_v4 }
  0x1c   :  { %183 = vmatprep.subr.bf16.mxu0 %v234_v0 }
  0x1f   :  { %184 = vmatpush3.bf16.msra.mxu0 %v204_v5 }
  0x20   :  { %185 = vmatprep.subr.bf16.mxu0 %v234_v0 }
  0x23   :  { %186 = vmatpush3.bf16.msra.mxu0 %v205_v6 }
  0x24   :  { %187 = vmatprep.subr.bf16.mxu0 %v234_v0 }
  0x27   :  { %188 = vmatpush3.bf16.msra.mxu0 %v206_v7 }
  0x28   :  { %189 = vmatprep.subr.bf16.mxu0 %v234_v0 }
  0x2b   :  { %190 = vmatpush3.bf16.msra.mxu0 %v207_v8 }
  0x2e   :  { %192 = vmatmul.mubr.bf16.vlgmr.msra.gmra.mxu0 %v208_v9 }
  0xee   :  { %v142_v11 = vpop.f32.mrf.mxu0 }
  0xef   :  { %v143_v12 = vadd.f32 %v156_v10, %v142_v11 }
  0xf0   :  { %v193_v13 = vpop.f32.mrf.mxu0 }
  0xf1   :  { %149 = vst [vmem:[%s274_s3] sm:$0xff] %v143_v12 }
  0xf2   :  { %v145_v14 = vpop.f32.mrf.mxu0 }
  0xf3   :  { %v146_v15 = vadd.f32 %v156_v10, %v145_v14 }
  0xf4   :  { %v194_v16 = vpop.f32.mrf.mxu0 }
  0xf5   :  { %150 = vst [vmem:[%s274_s3 + $0x8] sm:$0xff] %v146_v15 }
  0xf6   :  { %155 = vsyncpa [#allocation3], 1 }

</bundles_post_ra>
